<compile_context>
chip_gen: v7x
topology: tpu7x:2x2x1
jax: 0.10.0
libtpu: 0.0.40
codegen_flags: <defaults>
</compile_context>

<pallas_src>
import jax
import jax.numpy as jnp
from jax.experimental import pallas as pl
from jax.experimental.pallas import tpu as pltpu


def _policy_fused_kernel(x_ref, w_ref, o_ref):
    # x_ref: (tb, H+P)   fused [hidden0, persona] activations
    # w_ref: (H+P, H_pol) pre-stacked [W_u^T ; W_persona^T]
    # o_ref: (tb, H_pol)
    acc = jnp.dot(x_ref[...], w_ref[...], preferred_element_type=jnp.float32)
    o_ref[...] = jnp.tanh(acc).astype(o_ref.dtype)


def prepare_policy_params(w_u, w_persona):
    """Hoisted, one-time weight prep (do NOT call per forward step).

    w_u:       (H_pol, H)  -- PyTorch nn.Linear weight layout
    w_persona: (H_pol, P)
    returns:   (H + P, H_pol) stacked, transposed weight for a single fused dot.
    """
    return jnp.concatenate([jnp.transpose(w_u), jnp.transpose(w_persona)], axis=0)


def default_policy_forward(encodings, persona_tensor, w_stacked):
    """JAX/Pallas equivalent of DefaultPolicy.forward.

    encodings:      hidden of shape (num_layers, B, H) or a tuple (hidden, cell).
    persona_tensor: (B, P)
    w_stacked:      (H + P, H_pol) from prepare_policy_params (built once).
    """
    if isinstance(encodings, tuple):
        hidden = encodings[0]
    else:
        hidden = encodings

    h0 = hidden[0]                                         # (B, H) glue slice
    x = jnp.concatenate([h0, persona_tensor], axis=-1)     # (B, H+P) fused input

    B, K = x.shape
    h_pol = w_stacked.shape[1]

    # Pick a batch tile for large B; tiny B stays a single ungridded block.
    tb = None
    for cand in (512, 256, 128):
        if B > cand and B % cand == 0:
            tb = cand
            break

    if tb is None:
        # Single-block path: one launch, no grid-step overhead, everything VMEM.
        out = pl.pallas_call(
            _policy_fused_kernel,
            out_shape=jax.ShapeDtypeStruct((B, h_pol), h0.dtype),
            in_specs=[
                pl.BlockSpec(memory_space=pltpu.MemorySpace.VMEM),
                pl.BlockSpec(memory_space=pltpu.MemorySpace.VMEM),
            ],
            out_specs=pl.BlockSpec(memory_space=pltpu.MemorySpace.VMEM),
        )(x, w_stacked)
    else:
        # Gridded path: tile batch, keep the (tiny) weight VMEM-resident at
        # block (0, 0), shard the batch axis across TensorCores (v7x megacore).
        out = pl.pallas_call(
            _policy_fused_kernel,
            out_shape=jax.ShapeDtypeStruct((B, h_pol), h0.dtype),
            grid_spec=pltpu.PrefetchScalarGridSpec(
                num_scalar_prefetch=0,
                grid=(B // tb,),
                in_specs=[
                    pl.BlockSpec((tb, K), lambda i: (i, 0)),
                    pl.BlockSpec((K, h_pol), lambda i: (0, 0)),
                ],
                out_specs=pl.BlockSpec((tb, h_pol), lambda i: (i, 0)),
            ),
            compiler_params=pltpu.CompilerParams(
                dimension_semantics=("parallel",)),
        )(x, w_stacked)

    out = out[None, ...]                                   # unsqueeze(0)

    if isinstance(encodings, tuple):
        return (out, encodings[1])
    return out


if __name__ == "__main__":
    # Small, deterministic shapes consistent with the module's __init__.
    hidden_size_pol = 32
    hidden_size = 32
    persona_size = 16
    num_layers = 2
    batch = 2

    key = jax.random.PRNGKey(0)
    k1, k2, k3, k4, k5 = jax.random.split(key, 5)

    # Parameters (deterministic synthetic init, PyTorch Linear weight layout).
    w_u = jax.random.normal(k1, (hidden_size_pol, hidden_size), jnp.float32) * 0.1
    w_persona = jax.random.normal(k2, (hidden_size_pol, persona_size), jnp.float32) * 0.1

    # One-time weight prep (hoisted out of the forward path).
    w_stacked = prepare_policy_params(w_u, w_persona)

    # Inputs: encodings as an LSTM-style (hidden, cell) tuple.
    hidden = jax.random.normal(k3, (num_layers, batch, hidden_size), jnp.float32)
    cell = jax.random.normal(k4, (num_layers, batch, hidden_size), jnp.float32)
    persona = jax.random.normal(k5, (batch, persona_size), jnp.float32)

    # --- tuple path (small batch, single-block kernel) ---
    out, cell_out = default_policy_forward((hidden, cell), persona, w_u=None
                                           ) if False else default_policy_forward(
        (hidden, cell), persona, w_stacked)
    out = jax.block_until_ready(out)

    ref = jnp.tanh(hidden[0] @ w_u.T + persona @ w_persona.T)[None, ...]
    assert out.shape == (1, batch, hidden_size_pol)
    assert jnp.allclose(out, ref, atol=1e-5, rtol=1e-5)
    assert cell_out is cell

    # --- non-tuple path ---
    out2 = default_policy_forward(hidden, persona, w_stacked)
    out2 = jax.block_until_ready(out2)
    assert out2.shape == (1, batch, hidden_size_pol)
    assert jnp.allclose(out2, ref, atol=1e-5, rtol=1e-5)

    # --- large-batch gridded path (exercises the batch grid + parallel axis) ---
    big_b = 512
    k6, k7 = jax.random.split(k5)
    hidden_big = jax.random.normal(k6, (num_layers, big_b, hidden_size), jnp.float32)
    persona_big = jax.random.normal(k7, (big_b, persona_size), jnp.float32)
    out_big = default_policy_forward(hidden_big, persona_big, w_stacked)
    out_big = jax.block_until_ready(out_big)
    ref_big = jnp.tanh(hidden_big[0] @ w_u.T + persona_big @ w_persona.T)[None, ...]
    assert out_big.shape == (1, big_b, hidden_size_pol)
    assert jnp.allclose(out_big, ref_big, atol=1e-5, rtol=1e-5)

    print("KERNEL_OK")
</pallas_src>

<mosaic_0001>
module attributes {stable_mosaic.version = 11 : i64} {
  func.func @_policy_fused_kernel(%arg0: memref<2x48xf32, #tpu.memory_space<vmem>>, %arg1: memref<48x32xf32, #tpu.memory_space<vmem>>, %arg2: memref<2x32xf32, #tpu.memory_space<vmem>>) attributes {dimension_semantics = [], scalar_prefetch = 0 : i64, scratch_operands = 0 : i64, tpu.core_type = #tpu.core_type<tc>} {
    %c0 = arith.constant 0 : index
    %c0_0 = arith.constant 0 : index
    %0 = vector.load %arg0[%c0, %c0_0] : memref<2x48xf32, #tpu.memory_space<vmem>>, vector<2x48xf32>
    %c0_1 = arith.constant 0 : index
    %c0_2 = arith.constant 0 : index
    %1 = vector.load %arg1[%c0_1, %c0_2] : memref<48x32xf32, #tpu.memory_space<vmem>>, vector<48x32xf32>
    %cst = arith.constant dense<0.000000e+00> : vector<2x32xf32>
    %2 = tpu.matmul %0, %1, %cst {dimension_numbers = #tpu.dot_dimension_numbers<[1], [0], [0], [1], [0, 0, 1, 1], [], []>} : vector<2x48xf32>, vector<48x32xf32>, vector<2x32xf32> -> vector<2x32xf32>
    %3 = math.tanh %2 : vector<2x32xf32>
    %c0_3 = arith.constant 0 : index
    %c0_4 = arith.constant 0 : index
    %4 = vector.load %arg2[%c0_3, %c0_4] : memref<2x32xf32, #tpu.memory_space<vmem>>, vector<2x32xf32>
    tpu.vector_store %arg2[%c0_3, %c0_4], %3 {strides = array<i32>} : memref<2x32xf32, #tpu.memory_space<vmem>>, vector<2x32xf32>,
    return
  }
}

</mosaic_0001>

<bundles_post_ra>
// kernel: tpu_custom_call.1
= control target key start
LH: loop header
LB: loop body
LE: loop exit
PB: predicated region body
PF: predicated region fallthrough
CT: control target
= control target key end

     0   :  { %v172_v3 = vmov 0.0|0.0   ;;  %vm173_vm0 = vmmov 0   ;;  %v174_v6 = vmov 0.0   ;;  %s224_s0 = inlined_call_operand.vmem [shape: f32[2,48], index: 0, kind: input, shape index: {}]   ;;  %s225_s1 = inlined_call_operand.vmem [shape: f32[48,32], index: 1, kind: input, shape index: {}]   ;;  %s226_s2 = inlined_call_operand.hbm [shape: f32[2,32], index: 2, kind: output, shape index: {}]  }
   0x1   :  { %v13_v0 = vld [vmem:[%s225_s1] sm:$0xff]  ;;  %v14_v1 = vld [vmem:[%s225_s1 + $0x8] sm:$0xff]  ;;  %v15_v2 = vld [vmem:[%s225_s1 + $0x10] sm:$0xff]  ;;  %133 = vmatprep.subr.bf16.mxu0 %v172_v3  ;;  %130 = vmatprep.mubr.msk.f32.mxu0 %vm173_vm0, %v174_v6 }
   0x2   :  { %v134_v4 = vpack.c.bf16 %v14_v1, %v13_v0  ;;  %v16_v5 = vld [vmem:[%s225_s1 + $0x18] sm:$0xff] }
   0x3   :  { %7 = vsyncpa [#allocation3], 0  ;;  %v137_v7 = vpack.c.bf16 %v16_v5, %v15_v2  ;;  %v17_v8 = vld [vmem:[%s225_s1 + $0x20] sm:$0xff]  ;;  %v18_v9 = vld [vmem:[%s225_s1 + $0x28] sm:$0xff]  ;;  %vm19_vm1 = vcmask 392192   ;;  %s175_s23 = smov [#allocation2]  }
   0x4   :  { %135 = vmatpush3.bf16.msra.mxu0 %v134_v4  ;;  %v140_v10 = vpack.c.bf16 %v18_v9, %v17_v8  ;;  %v12_v11 = vld [vmem:[%s224_s0] sm:$0x3]  ;;  %s102_s24 = sshll.u32 %s175_s23, 4  ;;  %vm94_vm2 = vcmask 254976   ;;  %s103_s24 = int_to_ptr.vmem [resolvable:$true] %s102_s24 }
   0x5   :  { %136 = vmatprep.subr.bf16.mxu0 %v172_v3  ;;  %s148_s1 = scalar_lea.vmem %s103_s24, 32  ;;  %p153_p1 = scmp.lt.s32.totalorder %s103_s24, %s103_s24 }
   0x6   :  { %p149_p0 = scmp.ne.s32.totalorder %s103_s24, %s148_s1  ;;  %p154_p2 = scmp.lt.s32.totalorder %s148_s1, %s148_s1 }
   0x8   :  { %138 = vmatpush3.bf16.msra.mxu0 %v137_v7  ;;  %p155_p3 = por %p154_p2, %p153_p1 }
   0x9   :  { %139 = vmatprep.subr.bf16.mxu0 %v172_v3 }
   0xa   :  { %p156_p4 = pnand %p155_p3, %p149_p0 }
   0xc   :  { %141 = vmatpush3.bf16.msra.mxu0 %v140_v10 }
   0xf   :  { %131 = vmatmul.mubr.msk.f32.vlgmr.msra.gmra.mrb[0].mxu0 %vm19_vm1, %v12_v11 }
  0xe2   :  { %v89_v12 = vpop.f32.mrb[0].mxu0 }
  0xe3   :  { %146 = vtanh.f32 %v89_v12  ;;  %v132_v13 = vpop.f32.mrb[1].mxu0 }
  0xed   :  { %v147_v14 = vpop.eup %146 }
  0xee   :  { %95 = vst.msk [vmem:[#allocation2] sm:$0x3] %vm94_vm2, %v147_v14 }
  0xef   :  { %159 = shalt.err (!%p156_p4)
}
  0xf0   :  { %s160_s26 = scalar_lea.hbm %s226_s2, 32 }
  0xf1   :  { %p161_p5 = scmp.ne.s32.totalorder %s226_s2, %s160_s26  ;;  %p164_p6 = scmp.lt.u32.totalorder %s160_s26, %s226_s2 }
  0xf3   :  { %p166_p7 = pnand %p164_p6, %p161_p5 }
  0xf5   :  { %169 = shalt.err (!%p166_p7)
}
  0xf6   :  { %105 = dma.vmem_to_hbm [thread:$0]  %s103_s24, 32, %s226_s2, [#allocation3]  }
  0xf7   :  { %170 = dma.done.wait [#allocation3], 32  }
  0xf8   :  { %171 = vsyncadd [#allocation3], 4294967264 }
  0xf9   :  { %109 = vsyncpa [#allocation3], 1 }

</bundles_post_ra>
